<compile_context>
chip_gen: v6e
topology: v6e:2x2x1
jax: 0.10.0
libtpu: 0.0.40
codegen_flags: <defaults>
</compile_context>

<pallas_src>
import jax
import jax.numpy as jnp
from jax.experimental import pallas as pl
from jax.experimental.pallas import tpu as pltpu


def _round_up(n, m):
    return ((n + m - 1) // m) * m


def lenet5_fc1_kernel(x_ref, w1_ref, b1_ref, w2_ref, b2_ref, o_ref):
    # bf16 down-cast of the activation rides in MXU slack on the VPU.
    x_bf = x_ref[...].astype(jnp.bfloat16)
    # fc1 on the MXU: bf16 operands, f32 accumulation.
    h = jnp.dot(x_bf, w1_ref[...], preferred_element_type=jnp.float32)
    # Bias + ReLU in f32 on the VPU.
    h = jnp.maximum(h + b1_ref[...], 0.0)
    # Deliberate bf16 down-cast of the activation for the second MXU pass.
    h_bf16 = h.astype(jnp.bfloat16)
    out = jnp.dot(h_bf16, w2_ref[...], preferred_element_type=jnp.float32)
    o_ref[...] = (out + b2_ref[...]).astype(o_ref.dtype)


def prepare_lenet5_fc1_params(w1, b1, w2, b2):
    """One-time weight preprocessing (call at module init, reuse per forward).

    Pads the 10-wide class dim up to 128 lanes (unmasked full-lane stores in
    the kernel) and pre-casts MXU operands to bf16. Biases stay f32.
    """
    n_cls = w2.shape[1]
    n_pad = _round_up(n_cls, 128)
    w1_bf = w1.astype(jnp.bfloat16)
    w2_bf = jnp.pad(w2, ((0, 0), (0, n_pad - n_cls))).astype(jnp.bfloat16)
    b2_p = jnp.pad(b2, ((0, 0), (0, n_pad - n_cls)))
    return (w1_bf, b1, w2_bf, b2_p, n_cls)


def _choose_tiling(B, max_tm=2048):
    """Batch tile size / grid count.

    Small batch -> single grid step (no ~0.35 us per-step overhead on the
    single-TC v5e/v6e). Larger batch -> even grid count so v7x's two
    TensorCores split the 'parallel' axis evenly, with tm capped at 2048
    (a tm=2048 step double-buffered is a few MiB, far under any VMEM limit).
    """
    if B <= max_tm:
        n_tiles = 1 if B <= 512 else 2
    else:
        n_tiles = -(-B // max_tm)
        n_tiles += n_tiles % 2          # keep grid count even for dual-TC v7x
    tm = _round_up(-(-B // n_tiles), 16)  # multiple of 16 (bf16 sublane packing)
    return tm, n_tiles


def lenet5_fc1(x, params):
    """ReLU(x @ w1 + b1) @ w2 + b2.

    x      : (B, conv2_out*16) f32
    params : output of prepare_lenet5_fc1_params
    """
    w1_bf, b1, w2_bf, b2_p, n_cls = params
    B, f_in = x.shape
    lin1 = w1_bf.shape[1]
    n_pad = w2_bf.shape[1]

    tm, n_tiles = _choose_tiling(B)
    b_pad = tm * n_tiles
    if b_pad != B:
        x = jnp.pad(x, ((0, b_pad - B), (0, 0)))

    # Advisory cost: real class count / real output bytes (not the lane pad).
    flops = 2 * B * (f_in * lin1 + lin1 * n_cls)
    bytes_accessed = (x.size * 4 + w1_bf.size * 2 + w2_bf.size * 2
                      + b1.size * 4 + b2_p.size * 4 + B * n_cls * 2)

    out = pl.pallas_call(
        lenet5_fc1_kernel,
        out_shape=jax.ShapeDtypeStruct((b_pad, n_pad), jnp.bfloat16),
        grid=(n_tiles,),
        in_specs=[
            pl.BlockSpec((tm, f_in), lambda i: (i, 0)),     # x: tiled over batch
            pl.BlockSpec((f_in, lin1), lambda i: (0, 0)),   # w1: VMEM-resident
            pl.BlockSpec((1, lin1), lambda i: (0, 0)),      # b1: VMEM-resident
            pl.BlockSpec((lin1, n_pad), lambda i: (0, 0)),  # w2: VMEM-resident
            pl.BlockSpec((1, n_pad), lambda i: (0, 0)),     # b2: VMEM-resident
        ],
        out_specs=pl.BlockSpec((tm, n_pad), lambda i: (i, 0)),
        compiler_params=pltpu.CompilerParams(
            dimension_semantics=("parallel",)),
        cost_estimate=pl.CostEstimate(
            flops=flops, transcendentals=0, bytes_accessed=bytes_accessed),
    )(x, w1_bf, b1, w2_bf, b2_p)

    # Strip batch / class-lane padding; upcast to match the module's f32 output.
    return out[:B, :n_cls].astype(jnp.float32)


if __name__ == "__main__":
    # Config: conv2_out=4 -> in_features = 4*16 = 64, lin1_out=32, 10 classes.
    conv2_out = 4
    lin1_out = 32
    in_features = conv2_out * 16
    num_classes = 10
    batch = 2

    key = jax.random.PRNGKey(0)
    kx, kw1, kb1, kw2, kb2 = jax.random.split(key, 5)

    x = jax.random.normal(kx, (batch, in_features), dtype=jnp.float32)

    # Deterministic parameter init (PyTorch-Linear-like uniform bounds).
    bound1 = 1.0 / (in_features ** 0.5)
    w1 = jax.random.uniform(kw1, (in_features, lin1_out),
                            minval=-bound1, maxval=bound1, dtype=jnp.float32)
    b1 = jax.random.uniform(kb1, (1, lin1_out),
                            minval=-bound1, maxval=bound1, dtype=jnp.float32)

    bound2 = 1.0 / (lin1_out ** 0.5)
    w2 = jax.random.uniform(kw2, (lin1_out, num_classes),
                            minval=-bound2, maxval=bound2, dtype=jnp.float32)
    b2 = jax.random.uniform(kb2, (1, num_classes),
                            minval=-bound2, maxval=bound2, dtype=jnp.float32)

    # One-time weight preprocessing (hoisted off the per-call hot path).
    params = prepare_lenet5_fc1_params(w1, b1, w2, b2)

    out = lenet5_fc1(x, params)
    jax.block_until_ready(out)
    assert out.shape == (batch, num_classes)

    # Reference check in plain f32 JAX (bf16 MXU operands + bf16 writeback
    # -> loose tolerance).
    ref = jnp.maximum(x @ w1 + b1, 0.0) @ w2 + b2
    assert jnp.allclose(out, ref, atol=5e-2, rtol=5e-2), \
        float(jnp.max(jnp.abs(out - ref)))

    # Larger-batch smoke test exercising the even batch grid (grid=2).
    xb = jax.random.normal(kx, (1024, in_features), dtype=jnp.float32)
    outb = lenet5_fc1(xb, params)
    jax.block_until_ready(outb)
    refb = jnp.maximum(xb @ w1 + b1, 0.0) @ w2 + b2
    assert outb.shape == (1024, num_classes)
    assert jnp.allclose(outb, refb, atol=5e-2, rtol=5e-2)

    print("KERNEL_OK")
</pallas_src>

<mosaic_0001>
module attributes {stable_mosaic.version = 11 : i64} {
  func.func @lenet5_fc1_kernel(%arg0: i32, %arg1: memref<16x64xf32, #tpu.memory_space<vmem>>, %arg2: memref<64x32xbf16, #tpu.memory_space<vmem>>, %arg3: memref<1x32xf32, #tpu.memory_space<vmem>>, %arg4: memref<32x128xbf16, #tpu.memory_space<vmem>>, %arg5: memref<1x128xf32, #tpu.memory_space<vmem>>, %arg6: memref<16x128xbf16, #tpu.memory_space<vmem>>) attributes {dimension_semantics = [#tpu.dimension_semantics<parallel>], iteration_bounds = array<i64: 1>, scalar_prefetch = 0 : i64, scratch_operands = 0 : i64, tpu.core_type = #tpu.core_type<tc>, window_params = [{transform_indices = @transform_0, window_bounds = array<i64: 16, 64>}, {pipeline_mode = #tpu.pipeline_mode<synchronous>, transform_indices = @transform_1, window_bounds = array<i64: 64, 32>}, {pipeline_mode = #tpu.pipeline_mode<synchronous>, transform_indices = @transform_2, window_bounds = array<i64: 1, 32>}, {pipeline_mode = #tpu.pipeline_mode<synchronous>, transform_indices = @transform_3, window_bounds = array<i64: 32, 128>}, {pipeline_mode = #tpu.pipeline_mode<synchronous>, transform_indices = @transform_4, window_bounds = array<i64: 1, 128>}, {transform_indices = @transform_5, window_bounds = array<i64: 16, 128>}]} {
    %c0 = arith.constant 0 : index
    %c0_0 = arith.constant 0 : index
    %0 = vector.load %arg1[%c0, %c0_0] : memref<16x64xf32, #tpu.memory_space<vmem>>, vector<16x64xf32>
    %1 = arith.truncf %0 : vector<16x64xf32> to vector<16x64xbf16>
    %c0_1 = arith.constant 0 : index
    %c0_2 = arith.constant 0 : index
    %2 = vector.load %arg2[%c0_1, %c0_2] : memref<64x32xbf16, #tpu.memory_space<vmem>>, vector<64x32xbf16>
    %cst = arith.constant dense<0.000000e+00> : vector<16x32xf32>
    %3 = tpu.matmul %1, %2, %cst {dimension_numbers = #tpu.dot_dimension_numbers<[1], [0], [0], [1], [0, 0, 1, 1], [], []>} : vector<16x64xbf16>, vector<64x32xbf16>, vector<16x32xf32> -> vector<16x32xf32>
    %c0_3 = arith.constant 0 : index
    %c0_4 = arith.constant 0 : index
    %4 = vector.load %arg3[%c0_3, %c0_4] : memref<1x32xf32, #tpu.memory_space<vmem>>, vector<1x32xf32>
    %5 = vector.broadcast %4 : vector<1x32xf32> to vector<16x32xf32>
    %6 = arith.addf %3, %5 : vector<16x32xf32>
    %cst_5 = arith.constant 0.000000e+00 : f32
    %7 = vector.broadcast %cst_5 : f32 to vector<16x32xf32>
    %8 = arith.maximumf %6, %7 : vector<16x32xf32>
    %9 = arith.truncf %8 : vector<16x32xf32> to vector<16x32xbf16>
    %c0_6 = arith.constant 0 : index
    %c0_7 = arith.constant 0 : index
    %10 = vector.load %arg4[%c0_6, %c0_7] : memref<32x128xbf16, #tpu.memory_space<vmem>>, vector<32x128xbf16>
    %cst_8 = arith.constant dense<0.000000e+00> : vector<16x128xf32>
    %11 = tpu.matmul %9, %10, %cst_8 {dimension_numbers = #tpu.dot_dimension_numbers<[1], [0], [0], [1], [0, 0, 1, 1], [], []>} : vector<16x32xbf16>, vector<32x128xbf16>, vector<16x128xf32> -> vector<16x128xf32>
    %c0_9 = arith.constant 0 : index
    %c0_10 = arith.constant 0 : index
    %12 = vector.load %arg5[%c0_9, %c0_10] : memref<1x128xf32, #tpu.memory_space<vmem>>, vector<1x128xf32>
    %13 = vector.broadcast %12 : vector<1x128xf32> to vector<16x128xf32>
    %14 = arith.addf %11, %13 : vector<16x128xf32>
    %15 = arith.truncf %14 : vector<16x128xf32> to vector<16x128xbf16>
    %c0_11 = arith.constant 0 : index
    %c0_12 = arith.constant 0 : index
    %16 = vector.load %arg6[%c0_11, %c0_12] : memref<16x128xbf16, #tpu.memory_space<vmem>>, vector<16x128xbf16>
    tpu.vector_store %arg6[%c0_11, %c0_12], %15 {strides = array<i32>} : memref<16x128xbf16, #tpu.memory_space<vmem>>, vector<16x128xbf16>,
    return
  }
  func.func @transform_0(%arg0: i32) -> (i32, i32) {
    %c0_i32 = arith.constant 0 : i32
    %c0_i32_0 = arith.constant 0 : i32
    return %arg0, %c0_i32 : i32, i32
  }
  func.func @transform_1(%arg0: i32) -> (i32, i32) {
    %c0_i32 = arith.constant 0 : i32
    %c0_i32_0 = arith.constant 0 : i32
    %c0_i32_1 = arith.constant 0 : i32
    return %c0_i32, %c0_i32_0 : i32, i32
  }
  func.func @transform_2(%arg0: i32) -> (i32, i32) {
    %c0_i32 = arith.constant 0 : i32
    %c0_i32_0 = arith.constant 0 : i32
    %c0_i32_1 = arith.constant 0 : i32
    return %c0_i32, %c0_i32_0 : i32, i32
  }
  func.func @transform_3(%arg0: i32) -> (i32, i32) {
    %c0_i32 = arith.constant 0 : i32
    %c0_i32_0 = arith.constant 0 : i32
    %c0_i32_1 = arith.constant 0 : i32
    return %c0_i32, %c0_i32_0 : i32, i32
  }
  func.func @transform_4(%arg0: i32) -> (i32, i32) {
    %c0_i32 = arith.constant 0 : i32
    %c0_i32_0 = arith.constant 0 : i32
    %c0_i32_1 = arith.constant 0 : i32
    return %c0_i32, %c0_i32_0 : i32, i32
  }
  func.func @transform_5(%arg0: i32) -> (i32, i32) {
    %c0_i32 = arith.constant 0 : i32
    %c0_i32_0 = arith.constant 0 : i32
    return %arg0, %c0_i32 : i32, i32
  }
}

</mosaic_0001>

<bundles_post_ra>
// kernel: tpu_custom_call.1
= control target key start
LH: loop header
LB: loop body
LE: loop exit
PB: predicated region body
PF: predicated region fallthrough
CT: control target
= control target key end

     0   :  { %v286_v1 = vmov 0.0   ;;  %vm287_vm0 = vmmov 0   ;;  %s354_s0 = inlined_call_operand.vmem [shape: f32[16,64], index: 0, kind: input, shape index: {}]   ;;  %s355_s1 = inlined_call_operand.vmem [shape: bf16[64,32], index: 1, kind: input, shape index: {}]   ;;  %s356_s2 = inlined_call_operand.vmem [shape: f32[1,32], index: 2, kind: input, shape index: {}]   ;;  %s357_s3 = inlined_call_operand.vmem [shape: bf16[32,128], index: 3, kind: input, shape index: {}]   ;;  %s358_s4 = inlined_call_operand.vmem [shape: f32[1,128], index: 4, kind: input, shape index: {}]   ;;  %s359_s5 = inlined_call_operand.hbm [shape: bf16[16,128], index: 5, kind: output, shape index: {}]  }
   0x1   :  { %v258_v0 = vld [vmem:[%s355_s1 + $0x18] sm:$0xff]   ;;  %233 = vmatprep.subr.bf16.mxu0 %v286_v1  ;;  %245 = vmatprep.subr.bf16.mxu1 %v286_v1  ;;  %v259_v2 = vld [vmem:[%s355_s1 + $0x10] sm:$0xff]   ;;  %v260_v3 = vld [vmem:[%s355_s1 + $0x8] sm:$0xff]  }
   0x2   :  { %234 = vmatpush3.bf16.msra.mxu0 %v258_v0  ;;  %241 = vmatprep.mubr.msk.bf16.mxu0 %vm287_vm0, %v286_v1 }
   0x3   :  { %235 = vmatprep.subr.bf16.mxu0 %v286_v1  ;;  %249 = vmatprep.mubr.msk.bf16.mxu1 %vm287_vm0, %v286_v1 }
   0x6   :  { %236 = vmatpush3.bf16.msra.mxu0 %v259_v2 }
   0x7   :  { %10 = vsyncpa [#allocation3], 0  ;;  %237 = vmatprep.subr.bf16.mxu0 %v286_v1  ;;  %v261_v4 = vld [vmem:[%s355_s1] sm:$0xff]   ;;  %v23_v6 = vld [vmem:[%s354_s0 + $0x8] sm:$0xff]  ;;  %vm64_vm1 = vcmask 523264   ;;  %vm135_vm2 = vcmask 261120  }
   0x8   :  { %v22_v5 = vld [vmem:[%s354_s0] sm:$0xff]  ;;  %v262_v8 = vld [vmem:[%s357_s3 + $0x8] sm:$0xff]  }
   0x9   :  { %v24_v7 = vpack.c.bf16 %v23_v6, %v22_v5  ;;  %246 = vmatpush3.bf16.msra.mxu1 %v262_v8  ;;  %v263_v9 = vld [vmem:[%s357_s3] sm:$0xff]   ;;  %s288_s3 = smov [#allocation2]  }
   0xa   :  { %238 = vmatpush3.bf16.msra.mxu0 %v260_v3  ;;  %247 = vmatprep.subr.bf16.mxu1 %v286_v1  ;;  %v206_v10 = vld [vmem:[%s356_s2] ss:$0 sm:$0xff]  ;;  %s195_s11 = sshll.u32 %s288_s3, 4  ;;  %s196_s11 = int_to_ptr.vmem [resolvable:$true] %s195_s11 }
   0xb   :  { %239 = vmatprep.subr.bf16.mxu0 %v286_v1  ;;  %v212_v21 = vld [vmem:[%s358_s4] ss:$0 sm:$0xff]  ;;  %s264_s2 = scalar_lea.vmem %s196_s11, 128  ;;  %p269_p1 = scmp.lt.s32.totalorder %s196_s11, %s196_s11 }
   0xc   :  { %p265_p0 = scmp.ne.s32.totalorder %s196_s11, %s264_s2  ;;  %p270_p2 = scmp.lt.s32.totalorder %s264_s2, %s264_s2 }
   0xd   :  { %248 = vmatpush3.bf16.msra.mxu1 %v263_v9 }
   0xe   :  { %240 = vmatpush3.bf16.msra.mxu0 %v261_v4  ;;  %p271_p3 = por %p270_p2, %p269_p1 }
  0x10   :  { %p272_p4 = pnand %p271_p3, %p265_p0 }
  0x11   :  { %242 = vmatmul.mubr.msk.bf16.vlgmr.msra.gmra.mxu0 %vm64_vm1, %v24_v7 }
  0xd1   :  { %v102_v11 = vpop.f32.mrf.mxu0 }
  0xd2   :  { %v103_v13 = vadd.f32 %v206_v10, %v102_v11 }
  0xd3   :  { %v243_v12 = vpop.f32.mrf.mxu0 }
  0xd4   :  { %v109_v17 = vmax.f32 %v103_v13, 0.0 }
  0xd5   :  { %v105_v14 = vpop.f32.mrf.mxu0 }
  0xd6   :  { %v106_v15 = vadd.f32 %v206_v10, %v105_v14 }
  0xd7   :  { %v244_v16 = vpop.f32.mrf.mxu0 }
  0xd8   :  { %v110_v18 = vmax.f32 %v106_v15, 0.0 }
  0xda   :  { %v111_v19 = vpack.c.bf16 %v110_v18, %v109_v17 }
  0xdc   :  { %250 = vmatmul.mubr.msk.bf16.vlgmr.msra.gmra.mxu1 %vm135_vm2, %v111_v19 }
 0x19c   :  { %v173_v20 = vpop.f32.mrf.mxu1 }
 0x19d   :  { %v174_v24 = vadd.f32 %v212_v21, %v173_v20 }
 0x19e   :  { %v251_v22 = vpop.f32.mrf.mxu1 }
 0x1a0   :  { %v176_v23 = vpop.f32.mrf.mxu1 }
 0x1a1   :  { %v177_v25 = vadd.f32 %v212_v21, %v176_v23 }
 0x1a2   :  { %v252_v26 = vpop.f32.mrf.mxu1 }
 0x1a3   :  { %v223_v27 = vpack.c.bf16 %v177_v25, %v174_v24 }
 0x1a5   :  { %224 = vst [vmem:[#allocation2] sm:$0xff] %v223_v27  }
 0x1a6   :  { %275 = shalt.err (!%p272_p4)
}
 0x1a7   :  { %s289_s12 = smov 64   ;;  %s290_s13 = smov 4  }
 0x1a8   :  { %201 = dma.vmem_to_hbm [thread:$0]  %s196_s11, 128, %s359_s5, [#allocation3], %s289_s12, %s289_s12, %s290_s13  }
 0x1a9   :  { %284 = dma.done.wait [#allocation3], 128  }
 0x1aa   :  { %285 = vsyncadd [#allocation3], 4294967168 }
 0x1ab   :  { %205 = vsyncpa [#allocation3], 1 }

</bundles_post_ra>
